<compile_context>
chip_gen: v6e
topology: v6e:2x2x1
jax: 0.10.0
libtpu: 0.0.40
codegen_flags: <defaults>
</compile_context>

<pallas_src>
import math

import jax
import jax.numpy as jnp
from jax.experimental import pallas as pl
from jax.experimental.pallas import tpu as pltpu

LOG_2PI = math.log(2.0 * math.pi)

_SMALL_PROBLEM_BYTES = 4 << 20      # below this (z2 bytes) use plain jnp


def _default_block_bytes_budget():
    """VMEM budget for one input block (the pipeline double-buffers it).

    6 MiB -> 12 MiB double-buffered: well inside the default scoped VMEM on
    every generation (v5e/v6e: 128 MiB physical; v7x: 64 MiB physical,
    32 MiB scoped default).
    """
    budget = 6 << 20
    try:  # keep 2x block <= ~1/4 of physical VMEM (matters on v7x's 64 MiB)
        budget = min(budget, pltpu.get_tpu_info().vmem_capacity_bytes // 8)
    except Exception:  # info query unavailable -> keep the conservative 6 MiB
        pass
    return budget


def _plan_tiling(L, tb, itemsize, budget_bytes):
    """Choose the flattened-z2 lane tiling.

    Returns (L_pad, n_sub): per batch row z2 is viewed as (L_pad//128, 128)
    and tiled in (n_sub, 128) blocks along the first axis.
    L_pad == L  <=>  no padding copy is needed (split-view path).
    n_sub is always either the full row extent or a multiple of 8, keeping
    every block aligned to the (8, 128) vreg tiling.
    """
    n_ceil = pl.cdiv(L, 128)
    n_budget = max(8, budget_bytes // (tb * 128 * itemsize))
    # Prefer >=2 lane tiles per row (DMA/compute overlap; lets small-batch
    # cases split the reduction across both v7x TensorCores) — but never at
    # the price of an extra padding copy.
    if n_ceil >= 16:
        n_target = min(n_budget, max(8, ((n_ceil + 1) // 2 + 7) // 8 * 8))
    else:
        n_target = n_budget

    if L % 128 == 0:
        n = n_ceil
        for cap in (n_target, n_budget):
            if n <= cap:
                return L, n                       # whole row in one block
            divs = [d for d in range(8, cap + 1, 8) if n % d == 0]
            if divs:
                return L, max(divs)               # exact tiling, no copy
    # Ragged (or no acceptable divisor): zero-pad the row to a tile multiple.
    n_sub = min(n_target, n_ceil)
    if n_sub > 8:
        n_sub = (n_sub // 8) * 8
    L_pad = n_sub * 128 * pl.cdiv(L, n_sub * 128)
    return L_pad, n_sub


def _split2d_sumsq_kernel(z2_ref, ssq_ref, acc_ref):
    # z2_ref:  (tb, n_sub, 128) tile of flattened z2 (split axis squeezed).
    # ssq_ref: (1, tb, 1)       partial sum of z2**2 for this (split, batch) block.
    # acc_ref: (tb, 128)        f32 lane-partial accumulator (VMEM scratch).
    t = pl.program_id(2)

    @pl.when(t == 0)
    def _():
        acc_ref[...] = jnp.zeros_like(acc_ref)

    z2 = z2_ref[...].astype(jnp.float32)
    sq = z2 * z2                             # VPU
    # Mostly vreg-vreg VPU adds (sublane-block reduce); no cross-lane work here.
    acc_ref[...] += jnp.sum(sq, axis=1)

    @pl.when(t == pl.num_programs(2) - 1)
    def _():
        # Single deferred cross-lane (XLU) reduce per batch block.
        acc = acc_ref[...]
        ssq_ref[...] = jnp.sum(acc, axis=1, keepdims=True).reshape(
            1, acc.shape[0], 1)


class Split2dPallas:
    """JAX/Pallas port of Split2d.forward (reverse=False)."""

    def __init__(self, num_channels, block_bytes_budget=None,
                 small_problem_bytes=_SMALL_PROBLEM_BYTES):
        assert num_channels % 2 == 0, "Split2d expects an even channel count"
        self.num_channels = num_channels
        c_in = num_channels // 2
        # Conv2dZeros parameters (declared in __init__, *not* used by the
        # non-reverse forward(); zero-initialized like the PyTorch module).
        self.conv_weight = jnp.zeros((num_channels, c_in, 3, 3), jnp.float32)
        self.conv_bias = jnp.zeros((num_channels,), jnp.float32)
        self.conv_logs = jnp.zeros((num_channels, 1, 1), jnp.float32)
        # TODO(synk): `self.distribution` is never assigned in the reference
        # __init__; assumed to be a diagonal standard Gaussian (moglow default).
        self.block_bytes_budget = (block_bytes_budget
                                   if block_bytes_budget is not None
                                   else _default_block_bytes_budget())
        self.small_problem_bytes = small_problem_bytes

    # ------------------------------------------------------------------ api
    def forward(self, x, cond, logdet=0.0, *, force_kernel=False):
        B, C, T = x.shape
        assert C == self.num_channels
        c_half = C // 2

        # z1: contiguous channel-prefix slice — pure XLA, no kernel copy.
        z1 = x[:, :c_half, :]

        L = c_half * T                       # flattened z2 length per batch row
        itemsize = jnp.dtype(x.dtype).itemsize

        if force_kernel or B * L * itemsize >= self.small_problem_bytes:
            ssq = self._sumsq_z2(x, B, c_half, L, itemsize)
        else:
            # Small-problem fallback: launch + per-step overhead dominates.
            z2 = x[:, c_half:, :].astype(jnp.float32)
            ssq = jnp.sum(z2 * z2, axis=(1, 2))

        # Diagonal standard-Gaussian logp of z2 with constants folded outside
        # the kernel: logp = -0.5 * sum(z2^2) - 0.5 * N * log(2*pi).
        logp = -0.5 * ssq - 0.5 * L * LOG_2PI
        return z1, cond, logp + logdet

    # --------------------------------------------------------------- kernel
    def _sumsq_z2(self, x, B, c_half, L, itemsize):
        # tb is the full batch (B<=8) or exactly 8 — every block keeps the
        # (8,128)/full-dim tiling rule on its sublane dimension.
        tb = min(B, 8)
        nb = pl.cdiv(B, tb)
        L_pad, n_sub = _plan_tiling(L, tb, itemsize, self.block_bytes_budget)

        if L_pad == L:
            # Free reshape of the whole input; the BlockSpec picks the second
            # half of the (squeezed) split axis, so the kernel DMAs only z2.
            arr = x.reshape(B, 2, L // 128, 128)
            split_idx = 1
        else:
            # Ragged flattened length: slice z2 and zero-pad it to a multiple
            # of the lane tile (exact for a sum of squares).
            z2 = x[:, c_half:, :].reshape(B, L)
            z2 = jnp.pad(z2, ((0, 0), (0, L_pad - L)))
            arr = z2.reshape(B, 1, L_pad // 128, 128)
            split_idx = 0

        nt = (L_pad // 128) // n_sub
        # When the batch axis alone cannot give the two v7x TensorCores work,
        # split the reduction into two parallel halves (partial sums are
        # combined in the wrapper).  Harmless on single-core chips.
        ns = 2 if (nb == 1 and nt >= 2 and nt % 2 == 0) else 1
        nt_inner = nt // ns

        block_bytes = tb * n_sub * 128 * itemsize

        def in_index_map(s, b, t):
            return (b, split_idx, s * nt_inner + t, 0)

        # NOTE: when B % tb != 0 the last batch block reads past the end of
        # `arr` along the batch axis.  This is safe *only* because the kernel
        # reduces strictly per batch row (no cross-row mixing) and Pallas
        # masks the out-of-range output rows on writeback.
        out = pl.pallas_call(
            _split2d_sumsq_kernel,
            out_shape=jax.ShapeDtypeStruct((ns, B, 1), jnp.float32),
            grid_spec=pltpu.PrefetchScalarGridSpec(
                num_scalar_prefetch=0,
                grid=(ns, nb, nt_inner),
                in_specs=[
                    pl.BlockSpec((tb, None, n_sub, 128), in_index_map),
                ],
                # Same block index across the reduction axis => resident block,
                # written once under pl.when(last step).
                out_specs=pl.BlockSpec((1, tb, 1), lambda s, b, t: (s, b, 0)),
                scratch_shapes=[pltpu.VMEM((tb, 128), jnp.float32)],
            ),
            compiler_params=pltpu.CompilerParams(
                dimension_semantics=("parallel", "parallel", "arbitrary"),
                vmem_limit_bytes=int(max(32 << 20, 3 * block_bytes)),
            ),
        )(arr)
        return jnp.sum(out[:, :, 0], axis=0)


def _reference(x, cond, logdet=0.0):
    c_half = x.shape[1] // 2
    z1 = x[:, :c_half, :]
    z2 = x[:, c_half:, :].astype(jnp.float32)
    logp = jnp.sum(-0.5 * (LOG_2PI + z2 * z2), axis=(1, 2))
    return z1, cond, logp + logdet


if __name__ == "__main__":
    root_key = jax.random.PRNGKey(0)

    def _check(B, C, T, force_kernel=False, block_bytes_budget=None,
               atol=1e-3, rtol=2e-5):
        kx, kc = jax.random.split(
            jax.random.fold_in(root_key, B * 1000003 + C * 1009 + T))
        x = jax.random.normal(kx, (B, C, T), dtype=jnp.float32)
        cond = jax.random.normal(kc, (B, 2 * C, T), dtype=jnp.float32)

        module = Split2dPallas(num_channels=C,
                               block_bytes_budget=block_bytes_budget)
        z1, cond_out, logdet = module.forward(x, cond, logdet=0.0,
                                              force_kernel=force_kernel)
        jax.block_until_ready((z1, cond_out, logdet))

        z1_ref, cond_ref, logdet_ref = _reference(x, cond, 0.0)
        assert z1.shape == (B, C // 2, T)
        assert logdet.shape == (B,)
        assert jnp.allclose(z1, z1_ref)
        assert jnp.allclose(cond_out, cond_ref)
        assert jnp.allclose(logdet, logdet_ref, atol=atol, rtol=rtol), \
            (B, C, T, force_kernel)

    # primary small shape (BCT, like the PyTorch module) — jnp fallback path
    _check(B=2, C=4, T=16)
    # same small shape forced through the kernel: zero-padded path (L=32->128)
    _check(B=2, C=4, T=16, force_kernel=True)
    # split-view path, L = 3*384 = 1152 (9 lane rows), single reduction step
    _check(B=3, C=6, T=384, force_kernel=True)
    # split-view path, partial last batch block (B=10, tb=8 -> masked writes)
    _check(B=10, C=8, T=256, force_kernel=True)
    # multi-step reduction (tiny budget -> (8,128) tiles, 3 steps), split view
    _check(B=4, C=6, T=1024, force_kernel=True, block_bytes_budget=4096)
    # 2-way parallel reduction split (small batch, even tile count), split view
    _check(B=4, C=4, T=2048, force_kernel=True, block_bytes_budget=4096)
    # ragged flattened length -> zero-padded path (L=1200 -> 2048), 2 tiles
    _check(B=4, C=2, T=1200, force_kernel=True, block_bytes_budget=4096)
    # moderate shape taking the kernel path without forcing (z2 = 4 MiB)
    _check(B=8, C=8, T=32768)

    print("KERNEL_OK")
</pallas_src>

<mosaic_0001>
module attributes {stable_mosaic.version = 11 : i64} {
  func.func @_split2d_sumsq_kernel(%arg0: i32, %arg1: i32, %arg2: i32, %arg3: memref<2x1x1x128xf32, #tpu.memory_space<vmem>>, %arg4: memref<1x2x1xf32, #tpu.memory_space<vmem>>, %arg5: memref<2x128xf32, #tpu.memory_space<vmem>>) attributes {dimension_semantics = [#tpu.dimension_semantics<parallel>, #tpu.dimension_semantics<parallel>, #tpu.dimension_semantics<arbitrary>], iteration_bounds = array<i64: 1, 1, 1>, scalar_prefetch = 0 : i64, scratch_operands = 1 : i64, tpu.core_type = #tpu.core_type<tc>, window_params = [{transform_indices = @transform_0, window_bounds = array<i64: 2, 1, 1, 128>}, {transform_indices = @transform_1, window_bounds = array<i64: 1, 2, 1>}]} {
    %c0_i32 = arith.constant 0 : i32
    %0 = arith.cmpi eq, %arg2, %c0_i32 : i32
    %1 = arith.extui %0 : i1 to i32
    %c0_i32_0 = arith.constant 0 : i32
    %2 = arith.cmpi ne, %1, %c0_i32_0 : i32
    scf.if %2 {
      %cst_10 = arith.constant 0.000000e+00 : f32
      %13 = vector.broadcast %cst_10 : f32 to vector<2x128xf32>
      %c0_11 = arith.constant 0 : index
      %c0_12 = arith.constant 0 : index
      %14 = vector.load %arg5[%c0_11, %c0_12] : memref<2x128xf32, #tpu.memory_space<vmem>>, vector<2x128xf32>
      tpu.vector_store %arg5[%c0_11, %c0_12], %13 {strides = array<i32>} : memref<2x128xf32, #tpu.memory_space<vmem>>, vector<2x128xf32>,
    } else {
    }
    %c0 = arith.constant 0 : index
    %c0_1 = arith.constant 0 : index
    %c0_2 = arith.constant 0 : index
    %c0_3 = arith.constant 0 : index
    %3 = vector.load %arg3[%c0, %c0_1, %c0_2, %c0_3] : memref<2x1x1x128xf32, #tpu.memory_space<vmem>>, vector<2x1x1x128xf32>
    %4 = vector.shape_cast %3 : vector<2x1x1x128xf32> to vector<2x1x128xf32>
    %5 = arith.mulf %4, %4 : vector<2x1x128xf32>
    %c0_4 = arith.constant 0 : index
    %c0_5 = arith.constant 0 : index
    %6 = vector.load %arg5[%c0_4, %c0_5] : memref<2x128xf32, #tpu.memory_space<vmem>>, vector<2x128xf32>
    %cst = arith.constant dense<0.000000e+00> : vector<2x128xf32>
    %7 = vector.multi_reduction <add>, %5, %cst [1] : vector<2x1x128xf32> to vector<2x128xf32>
    %8 = arith.addf %6, %7 : vector<2x128xf32>
    %c0_6 = arith.constant 0 : index
    %c0_7 = arith.constant 0 : index
    %9 = vector.load %arg5[%c0_6, %c0_7] : memref<2x128xf32, #tpu.memory_space<vmem>>, vector<2x128xf32>
    tpu.vector_store %arg5[%c0_6, %c0_7], %8 {strides = array<i32>} : memref<2x128xf32, #tpu.memory_space<vmem>>, vector<2x128xf32>,
    %c0_i32_8 = arith.constant 0 : i32
    %10 = arith.cmpi eq, %arg2, %c0_i32_8 : i32
    %11 = arith.extui %10 : i1 to i32
    %c0_i32_9 = arith.constant 0 : i32
    %12 = arith.cmpi ne, %11, %c0_i32_9 : i32
    scf.if %12 {
      %c0_10 = arith.constant 0 : index
      %c0_11 = arith.constant 0 : index
      %13 = vector.load %arg5[%c0_10, %c0_11] : memref<2x128xf32, #tpu.memory_space<vmem>>, vector<2x128xf32>
      %cst_12 = arith.constant dense<0.000000e+00> : vector<2xf32>
      %14 = vector.multi_reduction <add>, %13, %cst_12 [1] : vector<2x128xf32> to vector<2xf32>
      %15 = vector.shape_cast %14 : vector<2xf32> to vector<2x1xf32>
      %16 = vector.shape_cast %15 : vector<2x1xf32> to vector<1x2x1xf32>
      %c0_13 = arith.constant 0 : index
      %c0_14 = arith.constant 0 : index
      %c0_15 = arith.constant 0 : index
      %17 = vector.load %arg4[%c0_13, %c0_14, %c0_15] : memref<1x2x1xf32, #tpu.memory_space<vmem>>, vector<1x2x1xf32>
      tpu.vector_store %arg4[%c0_13, %c0_14, %c0_15], %16 {strides = array<i32>} : memref<1x2x1xf32, #tpu.memory_space<vmem>>, vector<1x2x1xf32>,
    } else {
    }
    return
  }
  func.func @transform_0(%arg0: i32, %arg1: i32, %arg2: i32) -> (i32, i32, i32, i32) {
    %c1_i32 = arith.constant 1 : i32
    %0 = arith.muli %arg0, %c1_i32 : i32
    %1 = arith.addi %0, %arg2 : i32
    %c0_i32 = arith.constant 0 : i32
    %c0_i32_0 = arith.constant 0 : i32
    %c0_i32_1 = arith.constant 0 : i32
    return %arg1, %c0_i32, %1, %c0_i32_0 : i32, i32, i32, i32
  }
  func.func @transform_1(%arg0: i32, %arg1: i32, %arg2: i32) -> (i32, i32, i32) {
    %c0_i32 = arith.constant 0 : i32
    %c0_i32_0 = arith.constant 0 : i32
    return %arg0, %arg1, %c0_i32 : i32, i32, i32
  }
}

</mosaic_0001>

<bundles_post_ra>
// kernel: tpu_custom_call.1
= control target key start
LH: loop header
LB: loop body
LE: loop exit
PB: predicated region body
PF: predicated region fallthrough
CT: control target
= control target key end

     0   :  { %6 = vsyncpa [#allocation4], 0  ;;  %s100_s6 = smov [#allocation3]   ;;  %s121_s0 = inlined_call_operand.hbm [shape: f32[2,1,1,128], index: 0, kind: input, shape index: {}]   ;;  %s122_s1 = inlined_call_operand.vmem [shape: f32[1,2,1], index: 1, kind: output, shape index: {}]  }
   0x1   :  { %s15_s7 = sshll.u32 %s100_s6, 4  ;;  %s16_s7 = int_to_ptr.vmem [resolvable:$true] %s15_s7 }
   0x2   :  { %s86_s8 = scalar_lea.vmem %s16_s7, 32  ;;  %p91_p1 = scmp.lt.s32.totalorder %s16_s7, %s16_s7 }
   0x3   :  { %p87_p0 = scmp.ne.s32.totalorder %s16_s7, %s86_s8  ;;  %p92_p2 = scmp.lt.s32.totalorder %s86_s8, %s86_s8 }
   0x5   :  { %p93_p3 = por %p92_p2, %p91_p1 }
   0x7   :  { %p94_p4 = pnand %p93_p3, %p87_p0 }
   0x9   :  { %97 = shalt.err (!%p94_p4)
}
   0xa   :  { %s101_s9 = smov 16   ;;  %s102_s10 = smov 1  }
   0xb   :  { %21 = dma.hbm_to_vmem [thread:$0]  %s121_s0, 32, %s16_s7, [#allocation4], %s101_s9, %s101_s9, %s102_s10  }
   0xc   :  { %98 = dma.done.wait [#allocation4], 32  }
   0xd   :  { %99 = vsyncadd [#allocation4], 4294967264  ;;  %v44_v0 = vlaneseq  ;;  %v103_v1 = vmov 0.0   ;;  %v104_v2 = vmov 1966171168   ;;  %vm62_vm0 = vcmask 1041408  }
   0xe   :  { %30 = vst [vmem:[#allocation2] sm:$0x3] %v103_v1  ;;  %v42_v3 = vunpack.c.l.s4 %v104_v2  ;;  %v31_v6 = vld [vmem:[#allocation3] sm:$0x1]  ;;  %v32_v7 = vld [vmem:[#allocation3 + $0x1] sm:$0x1] }
   0xf   :  { %v45_v5 = vshrl.u32 %v44_v0, 7  ;;  %v33_v8 = vmul.f32 %v31_v6, %v31_v6  ;;  %v34_v9 = vmul.f32 %v32_v7, %v32_v7  ;;  %vm66_vm1 = vcmask 1024  }
  0x10   :  { %v43_v4 = vunpack.c.0.s8 %v42_v3 }
  0x11   :  { %v40_v11 = vcombine.low %v33_v8, %v34_v9 }
  0x12   :  { %v46_v10 = vsub.s32 %v43_v4, %v45_v5 }
  0x14   :  { %v47_v12 = vrot.slane %v40_v11, %v46_v10 }
  0x15   :  { %v35_v13 = vld [vmem:[#allocation2] sm:$0x3] }
  0x16   :  { %v54_v14 = vrot.slane %v47_v12, %v46_v10 }
  0x18   :  { %v56_v15 = vadd.f32 %v54_v14, %v35_v13 }
  0x1a   :  { %57 = vst [vmem:[#allocation2] sm:$0x3] %v56_v15 }
  0x21   :  { %v61_v16 = vld [vmem:[#allocation2] sm:$0x3] }
  0x22   :  { %v63_v17 = vsel %vm62_vm0, %v61_v16, 0.0 }
  0x23   :  { %64 = vadd.xlane.f32.xlu0 %v63_v17 }
  0xac   :  { %v65_v18 = vpop.xlane.xlu0 %64 }
  0xad   :  { %67 = vst.msk [vmem:[%s122_s1] sm:$0x3] %vm66_vm1, %v65_v18 }
  0xae   :  { %72 = vsyncpa [#allocation4], 1 }

</bundles_post_ra>
